<compile_context>
chip_gen: v6e
topology: v6e:2x2x1
jax: 0.10.0
libtpu: 0.0.40
codegen_flags: <defaults>
</compile_context>

<pallas_src>
import math

import jax
import jax.numpy as jnp
from jax.experimental import pallas as pl
from jax.experimental.pallas import tpu as pltpu


def make_positional_encoding_table(
    d_model: int, max_len: int = 1500, dtype=jnp.float32
) -> jnp.ndarray:
    """Sin/cos table matching the PyTorch buffer `pe` with its size-1 batch
    axis squeezed out: shape [max_len, d_model] (kept in f32 by default)."""
    pos = jnp.arange(max_len, dtype=jnp.float32)[:, None]                 # [max_len, 1]
    div = jnp.exp(
        jnp.arange(0, d_model, 2, dtype=jnp.float32)
        * (-math.log(10000.0) / d_model)
    )                                                                     # [ceil(d/2)]
    angles = pos * div                                                    # [max_len, ceil(d/2)]
    pe = jnp.zeros((max_len, d_model), dtype=jnp.float32)
    pe = pe.at[:, 0::2].set(jnp.sin(angles))
    pe = pe.at[:, 1::2].set(jnp.cos(angles[:, : d_model // 2]))
    return pe.astype(dtype)


def _round_up(x: int, m: int) -> int:
    return ((x + m - 1) // m) * m


def _pe_add_kernel(x_ref, pe_ref, o_ref):
    # x_ref : [ts, bb*d_model]   lane-dense tile of the flattened input
    # pe_ref: [ts, d_model]      tile of the positional-encoding table (f32)
    # o_ref : [ts, bb*d_model]
    lanes = x_ref.shape[-1]
    d_model = pe_ref.shape[-1]
    bb = lanes // d_model                         # static Python int

    pe_tile = pe_ref[...]
    if bb == 1:
        o_ref[...] = (x_ref[...] + pe_tile).astype(o_ref.dtype)
    elif d_model % 128 == 0:
        # Per-batch-chunk add: no [ts, lanes] pe_wide temp; every chunk is
        # 128-lane aligned so the stores stay unmasked.
        for b in range(bb):                       # static unroll (bb is small)
            sl = pl.ds(b * d_model, d_model)
            o_ref[:, sl] = (x_ref[:, sl] + pe_tile).astype(o_ref.dtype)
    else:
        # d_model not lane-aligned: bb misaligned masked chunk stores would be
        # worse than one XLU concat + a single wide store.
        pe_wide = jnp.concatenate([pe_tile] * bb, axis=-1)
        o_ref[...] = (x_ref[...] + pe_wide).astype(o_ref.dtype)


def positional_encoding_forward(
    x: jnp.ndarray,
    pe: jnp.ndarray,
    *,
    block_seq: int | None = None,
    batch_block: int | None = None,
    donate_x: bool = False,
    target_block_bytes: int = 2 * 1024 * 1024,
) -> jnp.ndarray:
    """x: [seq_len, batch, d_model]; pe: [max_len, d_model] (typically f32).
    Returns (x + pe[:seq_len]) broadcast over batch, cast to x.dtype."""
    seq_len, batch, d_model = x.shape
    max_len, pe_d = pe.shape
    if pe_d != d_model:
        raise ValueError(f"pe d_model {pe_d} != x d_model {d_model}")
    if seq_len > max_len:
        raise ValueError(f"seq_len {seq_len} exceeds pe max_len {max_len}")
    # NOTE: pe is deliberately NOT cast to x.dtype — the add happens in the
    # promoted (f32) precision like PyTorch, then the result is cast.

    lanes = batch * d_model
    x2d = x.reshape(seq_len, lanes)               # free row-major view
    itemsize = jnp.dtype(x.dtype).itemsize
    # Dtype-native sublane multiple: 8 rows f32, 16 bf16, 32 int8/fp8.
    sub = {4: 8, 2: 16, 1: 32}.get(itemsize, 8)

    # ---- Lane-axis (batch) blocking: guard huge batch*d_model (v7x 64 MiB VMEM).
    min_block_budget = 4 * 1024 * 1024            # budget for the minimum (sub-row) block
    if batch_block is None:
        bb = batch
        if batch > 1 and sub * lanes * itemsize > min_block_budget:
            for cand in range(batch - 1, 0, -1):  # largest divisor that fits, 128-aligned
                if (
                    batch % cand == 0
                    and (cand * d_model) % 128 == 0
                    and sub * cand * d_model * itemsize <= min_block_budget
                ):
                    bb = cand
                    break
    else:
        bb = max(1, min(batch_block, batch))
    block_lanes = bb * d_model

    # ---- Sequence-axis blocking: ~2 MiB x blocks (safe for v5e's 16 MiB scoped
    # VMEM with double buffering), clamped so the grid has >=4 steps when the
    # sequence allows it (pipeline overlap + balanced 2-TC split on v7x).
    row_bytes = block_lanes * itemsize
    if block_seq is None:
        ts = max(sub, min(target_block_bytes // max(row_bytes, 1), seq_len))
        if seq_len >= 4 * sub:
            ts = min(ts, _round_up(pl.cdiv(seq_len, 4), sub))
    else:
        ts = max(sub, block_seq)
    ts = _round_up(ts, sub)
    ts = min(ts, _round_up(seq_len, sub))

    grid = (pl.cdiv(seq_len, ts), pl.cdiv(batch, bb))

    out2d = pl.pallas_call(
        _pe_add_kernel,
        out_shape=jax.ShapeDtypeStruct((seq_len, lanes), x.dtype),
        grid_spec=pltpu.PrefetchScalarGridSpec(
            num_scalar_prefetch=0,
            grid=grid,
            in_specs=[
                pl.BlockSpec((ts, block_lanes), lambda i, j: (i, j)),
                pl.BlockSpec((ts, d_model), lambda i, j: (i, 0)),
            ],
            out_specs=pl.BlockSpec((ts, block_lanes), lambda i, j: (i, j)),
        ),
        compiler_params=pltpu.CompilerParams(
            # Both axes are independent; "parallel" lets megacore / v7x dual-TC
            # shard the grid.  (pltpu.CORE_PARALLEL is a per-chip tuning knob.)
            dimension_semantics=("parallel", "parallel"),
        ),
        input_output_aliases=({0: 0} if donate_x else {}),
    )(x2d, pe)

    return out2d.reshape(seq_len, batch, d_model)


def positional_encoding(
    x: jnp.ndarray, pe: jnp.ndarray, *, donate_x: bool = False
) -> jnp.ndarray:
    """Dispatcher: tiny activations or lane-misaligned flattening -> plain XLA
    broadcast-add (a standalone masked-store Pallas kernel would only lose);
    otherwise the lane-dense Pallas path."""
    seq_len, batch, d_model = x.shape
    lanes = batch * d_model
    if lanes % 128 != 0 or x.size * jnp.dtype(x.dtype).itemsize < (1 << 20):
        return (x + pe[:seq_len][:, None, :]).astype(x.dtype)
    return positional_encoding_forward(x, pe, donate_x=donate_x)


if __name__ == "__main__":
    key = jax.random.PRNGKey(0)
    max_len = 1500

    # --- Check 1: small shapes consistent with the module (seq=8, batch=2, d_model=32).
    #     Exercises the single-block path and the non-128 d_model branch.
    seq_len, batch, d_model = 8, 2, 32
    x = jax.random.normal(key, (seq_len, batch, d_model), dtype=jnp.float32)
    pe = make_positional_encoding_table(d_model, max_len)
    out = jax.block_until_ready(positional_encoding_forward(x, pe))
    ref = x + pe[:seq_len][:, None, :]
    assert out.shape == (seq_len, batch, d_model)
    assert jnp.allclose(out, ref, atol=1e-6), "mismatch vs reference (small)"

    # --- Check 2: multi-tile grid, partial last seq block, 128-aligned d_model
    #     (per-chunk unmasked-store path), f32.
    seq_len2, batch2, d_model2 = 200, 4, 128
    x2 = jax.random.normal(
        jax.random.PRNGKey(1), (seq_len2, batch2, d_model2), dtype=jnp.float32
    )
    pe2 = make_positional_encoding_table(d_model2, max_len)
    out2 = jax.block_until_ready(positional_encoding_forward(x2, pe2, block_seq=64))
    ref2 = x2 + pe2[:seq_len2][:, None, :]
    assert jnp.allclose(out2, ref2, atol=1e-6), "mismatch vs reference (tiled f32)"

    # --- Check 3: bf16 activations with f32 pe (in-kernel promotion), dtype-aware
    #     sublane rounding (16) and auto-chosen >=4-step grid.
    seq_len3, batch3, d_model3 = 300, 2, 256
    x3 = jax.random.normal(
        jax.random.PRNGKey(2), (seq_len3, batch3, d_model3), dtype=jnp.float32
    ).astype(jnp.bfloat16)
    pe3 = make_positional_encoding_table(d_model3, max_len)
    out3 = jax.block_until_ready(positional_encoding_forward(x3, pe3))
    ref3 = (x3 + pe3[:seq_len3][:, None, :]).astype(jnp.bfloat16)
    assert out3.dtype == jnp.bfloat16
    assert jnp.allclose(
        out3.astype(jnp.float32), ref3.astype(jnp.float32), atol=1e-2
    ), "mismatch vs reference (bf16)"

    print("KERNEL_OK")
</pallas_src>

<mosaic_0001>
module attributes {stable_mosaic.version = 11 : i64} {
  func.func @_pe_add_kernel(%arg0: i32, %arg1: i32, %arg2: memref<8x64xf32, #tpu.memory_space<vmem>>, %arg3: memref<8x32xf32, #tpu.memory_space<vmem>>, %arg4: memref<8x64xf32, #tpu.memory_space<vmem>>) attributes {dimension_semantics = [#tpu.dimension_semantics<parallel>, #tpu.dimension_semantics<parallel>], iteration_bounds = array<i64: 1, 1>, scalar_prefetch = 0 : i64, scratch_operands = 0 : i64, tpu.core_type = #tpu.core_type<tc>, window_params = [{transform_indices = @transform_0, window_bounds = array<i64: 8, 64>}, {transform_indices = @transform_1, window_bounds = array<i64: 8, 32>}, {transform_indices = @transform_2, window_bounds = array<i64: 8, 64>}]} {
    %c0 = arith.constant 0 : index
    %c0_0 = arith.constant 0 : index
    %0 = vector.load %arg3[%c0, %c0_0] : memref<8x32xf32, #tpu.memory_space<vmem>>, vector<8x32xf32>
    %1 = tpu.concatenate %0, %0 in 1 : vector<8x32xf32>, vector<8x32xf32> -> vector<8x64xf32>
    %c0_1 = arith.constant 0 : index
    %c0_2 = arith.constant 0 : index
    %2 = vector.load %arg2[%c0_1, %c0_2] : memref<8x64xf32, #tpu.memory_space<vmem>>, vector<8x64xf32>
    %3 = arith.addf %2, %1 : vector<8x64xf32>
    %c0_3 = arith.constant 0 : index
    %c0_4 = arith.constant 0 : index
    %4 = vector.load %arg4[%c0_3, %c0_4] : memref<8x64xf32, #tpu.memory_space<vmem>>, vector<8x64xf32>
    tpu.vector_store %arg4[%c0_3, %c0_4], %3 {strides = array<i32>} : memref<8x64xf32, #tpu.memory_space<vmem>>, vector<8x64xf32>,
    return
  }
  func.func @transform_0(%arg0: i32, %arg1: i32) -> (i32, i32) {
    %c0_i32 = arith.constant 0 : i32
    return %arg0, %arg1 : i32, i32
  }
  func.func @transform_1(%arg0: i32, %arg1: i32) -> (i32, i32) {
    %c0_i32 = arith.constant 0 : i32
    %c0_i32_0 = arith.constant 0 : i32
    return %arg0, %c0_i32 : i32, i32
  }
  func.func @transform_2(%arg0: i32, %arg1: i32) -> (i32, i32) {
    %c0_i32 = arith.constant 0 : i32
    return %arg0, %arg1 : i32, i32
  }
}

</mosaic_0001>

<bundles_post_ra>
// kernel: tpu_custom_call.1
= control target key start
LH: loop header
LB: loop body
LE: loop exit
PB: predicated region body
PF: predicated region fallthrough
CT: control target
= control target key end

     0   :  { %s87_s0 = inlined_call_operand.vmem [shape: f32[8,64], index: 0, kind: input, shape index: {}]   ;;  %s88_s1 = inlined_call_operand.vmem [shape: f32[1500,32], index: 1, kind: input, shape index: {}]   ;;  %s89_s2 = inlined_call_operand.hbm [shape: f32[8,64], index: 2, kind: output, shape index: {}]  }
   0x1   :  { %v12_v0 = vld [vmem:[%s88_s1] sm:$0xff] }
   0x2   :  { %7 = vsyncpa [#allocation3], 0  ;;  %s61_s11 = smov 32   ;;  %vm17_vm0 = vcmask 261120   ;;  %v19_v1 = vld [vmem:[%s87_s0] sm:$0xff]  ;;  %s62_s14 = smov [#allocation2]  }
   0x3   :  { %14 = vrot.lane.b32.xlu0 %v12_v0, %s61_s11  ;;  %s29_s15 = sshll.u32 %s62_s14, 4  ;;  %vm21_vm1 = vcmask 523264   ;;  %s30_s15 = int_to_ptr.vmem [resolvable:$true] %s29_s15 }
   0x4   :  { %s39_s16 = scalar_lea.vmem %s30_s15, 128  ;;  %p44_p1 = scmp.lt.s32.totalorder %s30_s15, %s30_s15 }
   0x5   :  { %p40_p0 = scmp.ne.s32.totalorder %s30_s15, %s39_s16  ;;  %p45_p2 = scmp.lt.s32.totalorder %s39_s16, %s39_s16 }
   0x7   :  { %p46_p3 = por %p45_p2, %p44_p1 }
   0x9   :  { %p47_p4 = pnand %p46_p3, %p40_p0 }
  0x75   :  { %v15_v2 = vpop.permute.xlu0 %14 }
  0x76   :  { %v18_v3 = vsel %vm17_vm0, %v12_v0, %v15_v2 }
  0x77   :  { %v20_v4 = vadd.f32 %v19_v1, %v18_v3 }
  0x79   :  { %22 = vst.msk [vmem:[#allocation2] sm:$0xff] %vm21_vm1, %v20_v4 }
  0x7a   :  { %50 = shalt.err (!%p47_p4)
}
  0x7b   :  { %32 = dma.vmem_to_hbm [thread:$0]  %s30_s15, 128, %s89_s2, [#allocation3]  }
  0x7c   :  { %59 = dma.done.wait [#allocation3], 128  }
  0x7d   :  { %60 = vsyncadd [#allocation3], 4294967168 }
  0x7e   :  { %36 = vsyncpa [#allocation3], 1 }

</bundles_post_ra>
